<compile_context>
chip_gen: v6e
topology: v6e:2x2x1
jax: 0.10.0
libtpu: 0.0.40
codegen_flags: <defaults>
</compile_context>

<pallas_src>
import functools

import jax
import jax.numpy as jnp
from jax.experimental import pallas as pl
from jax.experimental.pallas import tpu as pltpu


def _round_up(n, m):
    return (n + m - 1) // m * m


# --------------------------------------------------------------------------
# Kernel: x -> relu(x@W1+b1) -> relu(@W2+b2) -> relu(@W3+b3) -> sum(*w4)+b4
#   W1 is the block-diag fusion of the two head-input layers,
#   W2 the block-diag fusion of the two head-hidden layers,
#   W3 the original net[0] (64->64), w4 the original net[2] (64->1) as a row.
# --------------------------------------------------------------------------
def _qnet_kernel(d_in, r1, r2, r3, x_ref, w_ref, b_ref, out_ref):
    x = x_ref[...]                                     # (Bt, d_in)
    bias = b_ref[...]                                  # (4, 64)
    b1 = bias[0:1, :]
    b2 = bias[1:2, :]
    b3 = bias[2:3, :]
    b4 = bias[3:4, 0:1]                                # (1, 1)

    w1 = w_ref[0:d_in, :]                              # (d_in, 64) block-diag
    h = jnp.maximum(
        jnp.dot(x, w1, preferred_element_type=jnp.float32) + b1, 0.0)

    w2 = w_ref[r1:r1 + 64, :]                          # (64, 64) block-diag
    h = jnp.maximum(
        jnp.dot(h, w2, preferred_element_type=jnp.float32) + b2, 0.0)

    w3 = w_ref[r2:r2 + 64, :]                          # (64, 64)
    h = jnp.maximum(
        jnp.dot(h, w3, preferred_element_type=jnp.float32) + b3, 0.0)

    # Final 64->1 layer on the VPU/XLU instead of a wasted N=1 MXU pass.
    w4 = w_ref[r3:r3 + 1, :]                           # (1, 64)
    q = jnp.sum(h * w4, axis=-1, keepdims=True) + b4   # (Bt, 1)
    out_ref[...] = q


# --------------------------------------------------------------------------
# Wrapper
# --------------------------------------------------------------------------
def qnet_forward(states, actions, w_pack, b_pack, meta, *, block_b=1024):
    """states: (B, ...obs), actions: (B, A); returns (B, 1) f32."""
    B = states.shape[0]
    d_in, r1, r2, r3 = meta["d_in"], meta["r1"], meta["r2"], meta["r3"]
    rows = w_pack.shape[0]

    x = jnp.concatenate(
        [states.reshape(B, -1), actions.reshape(B, -1)], axis=1
    ).astype(jnp.float32)
    assert x.shape[1] == d_in

    if B <= block_b:
        bt, bp = B, B
    else:
        bt = block_b                                   # multiple of 8
        bp = pl.cdiv(B, bt) * bt
        if bp != B:
            x = jnp.pad(x, ((0, bp - B), (0, 0)))      # zero rows: harmless
    grid = (bp // bt,)

    kernel = functools.partial(_qnet_kernel, d_in, r1, r2, r3)
    out = pl.pallas_call(
        kernel,
        out_shape=jax.ShapeDtypeStruct((bp, 1), jnp.float32),
        grid=grid,
        in_specs=[
            pl.BlockSpec((bt, d_in), lambda i: (i, 0)),   # activations, tiled
            pl.BlockSpec((rows, 64), lambda i: (0, 0)),   # weight slab, resident
            pl.BlockSpec((4, 64), lambda i: (0, 0)),      # bias slab, resident
        ],
        out_specs=pl.BlockSpec((bt, 1), lambda i: (i, 0)),
        compiler_params=pltpu.CompilerParams(
            dimension_semantics=("parallel",)),           # megacore on v7x
    )(x, w_pack, b_pack)
    return out[:B]


# --------------------------------------------------------------------------
# Parameter construction / packing
# --------------------------------------------------------------------------
def make_params(key, flat_obs_dim, act_count):
    """Per-layer params; weights stored as (in_features, out_features)."""
    ks = jax.random.split(key, 8)

    def ortho(k, shape):
        return jax.nn.initializers.orthogonal()(k, shape, jnp.float32)

    return {
        # states_head
        "w1s": ortho(ks[0], (flat_obs_dim, 32)), "b1s": jnp.zeros((32,), jnp.float32),
        "w2s": ortho(ks[1], (32, 32)),           "b2s": jnp.zeros((32,), jnp.float32),
        # action_head
        "w1a": ortho(ks[2], (act_count, 32)),    "b1a": jnp.zeros((32,), jnp.float32),
        "w2a": ortho(ks[3], (32, 32)),           "b2a": jnp.zeros((32,), jnp.float32),
        # net
        "w3": ortho(ks[4], (64, 64)),            "b3": jnp.zeros((64,), jnp.float32),
        "w4": ortho(ks[5], (64, 1)),             "b4": jnp.zeros((1,), jnp.float32),
    }


def pack_qnet_params(p, flat_obs_dim, act_count):
    """Pack all weights into one (rows,64) slab and all biases into (4,64).

    Row layout (each segment starts on a sublane-aligned offset):
      [0,        d_in)   W1 block-diag:  [[w1s, 0], [0, w1a]]
      [r1,   r1 + 64)    W2 block-diag:  [[w2s, 0], [0, w2a]]
      [r2,   r2 + 64)    W3
      [r3]               w4 as a row
    """
    d_in = flat_obs_dim + act_count
    r1 = _round_up(d_in, 8)
    r2 = r1 + 64
    r3 = r2 + 64
    rows = _round_up(r3 + 1, 8)

    w = jnp.zeros((rows, 64), jnp.float32)
    w = w.at[0:flat_obs_dim, 0:32].set(p["w1s"])
    w = w.at[flat_obs_dim:d_in, 32:64].set(p["w1a"])
    w = w.at[r1:r1 + 32, 0:32].set(p["w2s"])
    w = w.at[r1 + 32:r1 + 64, 32:64].set(p["w2a"])
    w = w.at[r2:r2 + 64, :].set(p["w3"])
    w = w.at[r3, :].set(p["w4"][:, 0])

    b = jnp.zeros((4, 64), jnp.float32)
    b = b.at[0, 0:32].set(p["b1s"])
    b = b.at[0, 32:64].set(p["b1a"])
    b = b.at[1, 0:32].set(p["b2s"])
    b = b.at[1, 32:64].set(p["b2a"])
    b = b.at[2, :].set(p["b3"])
    b = b.at[3, :].set(p["b4"][0])        # b4 broadcast across the row

    meta = {"d_in": d_in, "r1": r1, "r2": r2, "r3": r3}
    return w, b, meta


# --------------------------------------------------------------------------
# Plain-JAX reference mirroring the torch forward (unfused), for checking.
# --------------------------------------------------------------------------
def qnet_reference(states, actions, p):
    s = jnp.maximum(states @ p["w1s"] + p["b1s"], 0.0)
    s = jnp.maximum(s @ p["w2s"] + p["b2s"], 0.0)
    a = jnp.maximum(actions @ p["w1a"] + p["b1a"], 0.0)
    a = jnp.maximum(a @ p["w2a"] + p["b2a"], 0.0)
    x = jnp.concatenate([s, a], axis=1)
    h = jnp.maximum(x @ p["w3"] + p["b3"], 0.0)
    return h @ p["w4"] + p["b4"]


if __name__ == "__main__":
    key = jax.random.PRNGKey(0)
    k_s, k_a, k_p = jax.random.split(key, 3)

    B = 8                      # batch
    obs_shape = (4, 4)         # flat_obs_dim = 16
    flat_obs_dim = 16
    act_count = 4

    states = jax.random.normal(k_s, (B, flat_obs_dim), jnp.float32)
    actions = jax.random.normal(k_a, (B, act_count), jnp.float32)

    params = make_params(k_p, flat_obs_dim, act_count)
    w_pack, b_pack, meta = pack_qnet_params(params, flat_obs_dim, act_count)

    out = qnet_forward(states, actions, w_pack, b_pack, meta)
    out = jax.block_until_ready(out)

    ref = qnet_reference(states, actions, params)
    assert out.shape == (B, 1)
    assert jnp.allclose(out, ref, atol=1e-4, rtol=1e-4), "mismatch vs reference"

    print("KERNEL_OK")
</pallas_src>

<mosaic_0001>
module attributes {stable_mosaic.version = 11 : i64} {
  func.func @_qnet_kernel(%arg0: i32, %arg1: memref<8x20xf32, #tpu.memory_space<vmem>>, %arg2: memref<160x64xf32, #tpu.memory_space<vmem>>, %arg3: memref<4x64xf32, #tpu.memory_space<vmem>>, %arg4: memref<8x1xf32, #tpu.memory_space<vmem>>) attributes {dimension_semantics = [#tpu.dimension_semantics<parallel>], iteration_bounds = array<i64: 1>, scalar_prefetch = 0 : i64, scratch_operands = 0 : i64, tpu.core_type = #tpu.core_type<tc>, window_params = [{transform_indices = @transform_0, window_bounds = array<i64: 8, 20>}, {pipeline_mode = #tpu.pipeline_mode<synchronous>, transform_indices = @transform_1, window_bounds = array<i64: 160, 64>}, {pipeline_mode = #tpu.pipeline_mode<synchronous>, transform_indices = @transform_2, window_bounds = array<i64: 4, 64>}, {transform_indices = @transform_3, window_bounds = array<i64: 8, 1>}]} {
    %c0 = arith.constant 0 : index
    %c0_0 = arith.constant 0 : index
    %0 = vector.load %arg1[%c0, %c0_0] : memref<8x20xf32, #tpu.memory_space<vmem>>, vector<8x20xf32>
    %c0_1 = arith.constant 0 : index
    %c0_2 = arith.constant 0 : index
    %1 = vector.load %arg3[%c0_1, %c0_2] : memref<4x64xf32, #tpu.memory_space<vmem>>, vector<4x64xf32>
    %2 = vector.extract_strided_slice %1 {offsets = [0, 0], sizes = [1, 64], strides = [1, 1]} : vector<4x64xf32> to vector<1x64xf32>
    %3 = vector.extract_strided_slice %1 {offsets = [1, 0], sizes = [1, 64], strides = [1, 1]} : vector<4x64xf32> to vector<1x64xf32>
    %4 = vector.extract_strided_slice %1 {offsets = [2, 0], sizes = [1, 64], strides = [1, 1]} : vector<4x64xf32> to vector<1x64xf32>
    %5 = vector.extract_strided_slice %1 {offsets = [3, 0], sizes = [1, 1], strides = [1, 1]} : vector<4x64xf32> to vector<1x1xf32>
    %c0_3 = arith.constant 0 : index
    %c0_4 = arith.constant 0 : index
    %6 = vector.load %arg2[%c0_3, %c0_4] : memref<160x64xf32, #tpu.memory_space<vmem>>, vector<20x64xf32>
    %cst = arith.constant dense<0.000000e+00> : vector<8x64xf32>
    %7 = tpu.matmul %0, %6, %cst {dimension_numbers = #tpu.dot_dimension_numbers<[1], [0], [0], [1], [0, 0, 1, 1], [], []>} : vector<8x20xf32>, vector<20x64xf32>, vector<8x64xf32> -> vector<8x64xf32>
    %8 = vector.broadcast %2 : vector<1x64xf32> to vector<8x64xf32>
    %9 = arith.addf %7, %8 : vector<8x64xf32>
    %cst_5 = arith.constant 0.000000e+00 : f32
    %10 = vector.broadcast %cst_5 : f32 to vector<8x64xf32>
    %11 = arith.maximumf %9, %10 : vector<8x64xf32>
    %c24 = arith.constant 24 : index
    %c0_6 = arith.constant 0 : index
    %12 = vector.load %arg2[%c24, %c0_6] : memref<160x64xf32, #tpu.memory_space<vmem>>, vector<64x64xf32>
    %cst_7 = arith.constant dense<0.000000e+00> : vector<8x64xf32>
    %13 = tpu.matmul %11, %12, %cst_7 {dimension_numbers = #tpu.dot_dimension_numbers<[1], [0], [0], [1], [0, 0, 1, 1], [], []>} : vector<8x64xf32>, vector<64x64xf32>, vector<8x64xf32> -> vector<8x64xf32>
    %14 = vector.broadcast %3 : vector<1x64xf32> to vector<8x64xf32>
    %15 = arith.addf %13, %14 : vector<8x64xf32>
    %cst_8 = arith.constant 0.000000e+00 : f32
    %16 = vector.broadcast %cst_8 : f32 to vector<8x64xf32>
    %17 = arith.maximumf %15, %16 : vector<8x64xf32>
    %c88 = arith.constant 88 : index
    %c0_9 = arith.constant 0 : index
    %18 = vector.load %arg2[%c88, %c0_9] : memref<160x64xf32, #tpu.memory_space<vmem>>, vector<64x64xf32>
    %cst_10 = arith.constant dense<0.000000e+00> : vector<8x64xf32>
    %19 = tpu.matmul %17, %18, %cst_10 {dimension_numbers = #tpu.dot_dimension_numbers<[1], [0], [0], [1], [0, 0, 1, 1], [], []>} : vector<8x64xf32>, vector<64x64xf32>, vector<8x64xf32> -> vector<8x64xf32>
    %20 = vector.broadcast %4 : vector<1x64xf32> to vector<8x64xf32>
    %21 = arith.addf %19, %20 : vector<8x64xf32>
    %cst_11 = arith.constant 0.000000e+00 : f32
    %22 = vector.broadcast %cst_11 : f32 to vector<8x64xf32>
    %23 = arith.maximumf %21, %22 : vector<8x64xf32>
    %c152 = arith.constant 152 : index
    %c0_12 = arith.constant 0 : index
    %24 = vector.load %arg2[%c152, %c0_12] : memref<160x64xf32, #tpu.memory_space<vmem>>, vector<1x64xf32>
    %25 = vector.broadcast %24 : vector<1x64xf32> to vector<8x64xf32>
    %26 = arith.mulf %23, %25 : vector<8x64xf32>
    %cst_13 = arith.constant dense<0.000000e+00> : vector<8xf32>
    %27 = vector.multi_reduction <add>, %26, %cst_13 [1] : vector<8x64xf32> to vector<8xf32>
    %28 = vector.shape_cast %27 : vector<8xf32> to vector<8x1xf32>
    %29 = vector.broadcast %5 : vector<1x1xf32> to vector<8x1xf32>
    %30 = arith.addf %28, %29 : vector<8x1xf32>
    %c0_14 = arith.constant 0 : index
    %c0_15 = arith.constant 0 : index
    %31 = vector.load %arg4[%c0_14, %c0_15] : memref<8x1xf32, #tpu.memory_space<vmem>>, vector<8x1xf32>
    tpu.vector_store %arg4[%c0_14, %c0_15], %30 {strides = array<i32>} : memref<8x1xf32, #tpu.memory_space<vmem>>, vector<8x1xf32>,
    return
  }
  func.func @transform_0(%arg0: i32) -> (i32, i32) {
    %c0_i32 = arith.constant 0 : i32
    %c0_i32_0 = arith.constant 0 : i32
    return %arg0, %c0_i32 : i32, i32
  }
  func.func @transform_1(%arg0: i32) -> (i32, i32) {
    %c0_i32 = arith.constant 0 : i32
    %c0_i32_0 = arith.constant 0 : i32
    %c0_i32_1 = arith.constant 0 : i32
    return %c0_i32, %c0_i32_0 : i32, i32
  }
  func.func @transform_2(%arg0: i32) -> (i32, i32) {
    %c0_i32 = arith.constant 0 : i32
    %c0_i32_0 = arith.constant 0 : i32
    %c0_i32_1 = arith.constant 0 : i32
    return %c0_i32, %c0_i32_0 : i32, i32
  }
  func.func @transform_3(%arg0: i32) -> (i32, i32) {
    %c0_i32 = arith.constant 0 : i32
    %c0_i32_0 = arith.constant 0 : i32
    return %arg0, %c0_i32 : i32, i32
  }
}

</mosaic_0001>

<bundles_post_ra>
// kernel: tpu_custom_call.1
= control target key start
LH: loop header
LB: loop body
LE: loop exit
PB: predicated region body
PF: predicated region fallthrough
CT: control target
= control target key end

     0   :  { %vm27_vm0 = vcmask 1043456   ;;  %v371_v0 = vmov 0.0   ;;  %vm372_vm1 = vmmov 0   ;;  %vm23_vm2 = vcmask 162816   ;;  %s490_s1 = inlined_call_operand.vmem [shape: f32[160,64], index: 1, kind: input, shape index: {}]   ;;  %s491_s0 = inlined_call_operand.vmem [shape: f32[8,20], index: 0, kind: input, shape index: {}]   ;;  %s492_s2 = inlined_call_operand.vmem [shape: f32[4,64], index: 2, kind: input, shape index: {}]   ;;  %s493_s3 = inlined_call_operand.vmem [shape: f32[8,1], index: 3, kind: output, shape index: {}]  }
   0x1   :  { %322 = vmatprep.subr.mxu0 %v371_v0  ;;  %v18_v1 = vld [vmem:[%s490_s1 + $0x10] sm:$0xf]  ;;  %v17_v2 = vld [vmem:[%s490_s1 + $0x8] sm:$0xff]  ;;  %328 = vmatprep.mubr.msk.f32.mxu0 %vm372_vm1, %v371_v0  ;;  %v16_v5 = vld [vmem:[%s490_s1] sm:$0xff]  ;;  %v19_v18 = vlaneseq  ;;  %vm114_vm3 = vcmask 523264   ;;  %vm289_vm4 = vcmask 7168  }
   0x2   :  { %323 = vmatpush3.msk.msra.mxu0 %vm27_vm0, %v18_v1  ;;  %331 = vmatprep.subr.mxu1 %v371_v0  ;;  %v109_v3 = vld [vmem:[%s490_s1 + $0x50] sm:$0xff]  ;;  %v108_v4 = vld [vmem:[%s490_s1 + $0x48] sm:$0xff]  ;;  %v14_v6 = vld [vmem:[%s491_s0] sm:$0xff] }
   0x3   :  { %324 = vmatprep.subr.mxu0 %v371_v0  ;;  %332 = vmatpush3.msra.mxu1 %v109_v3  ;;  %v107_v7 = vld [vmem:[%s490_s1 + $0x40] sm:$0xff]  ;;  %v106_v8 = vld [vmem:[%s490_s1 + $0x38] sm:$0xff]  ;;  %v105_v9 = vld [vmem:[%s490_s1 + $0x30] sm:$0xff]  ;;  %v20_v19 = vshrl.u32 %v19_v18, 7 }
   0x4   :  { %325 = vmatpush3.msra.mxu0 %v17_v2  ;;  %333 = vmatprep.subr.mxu1 %v371_v0  ;;  %v104_v10 = vld [vmem:[%s490_s1 + $0x28] sm:$0xff]  ;;  %v103_v11 = vld [vmem:[%s490_s1 + $0x20] sm:$0xff]  ;;  %v102_v12 = vld [vmem:[%s490_s1 + $0x18] sm:$0xff] }
   0x5   :  { %326 = vmatprep.subr.mxu0 %v371_v0  ;;  %334 = vmatpush3.msra.mxu1 %v108_v4  ;;  %v196_v13 = vld [vmem:[%s490_s1 + $0x90] sm:$0xff]  ;;  %v195_v14 = vld [vmem:[%s490_s1 + $0x88] sm:$0xff]  ;;  %v194_v15 = vld [vmem:[%s490_s1 + $0x80] sm:$0xff]  ;;  %v21_v20 = vsub.s32 0, %v20_v19  ;;  %v112_v30 = vsub.s32 1, %v20_v19  ;;  %v199_v36 = vsub.s32 2, %v20_v19 }
   0x6   :  { %327 = vmatpush3.msra.mxu0 %v16_v5  ;;  %335 = vmatprep.subr.mxu1 %v371_v0  ;;  %v193_v16 = vld [vmem:[%s490_s1 + $0x78] sm:$0xff]  ;;  %v192_v17 = vld [vmem:[%s490_s1 + $0x70] sm:$0xff]  ;;  %v15_v21 = vld [vmem:[%s492_s2] sm:$0xf]  ;;  %v286_v45 = vsub.s32 3, %v20_v19 }
   0x7   :  { %329 = vmatmul.mubr.msk.f32.vlgmr.msra.gmra.mxu0 %vm23_vm2, %v14_v6  ;;  %336 = vmatpush3.msra.mxu1 %v107_v7  ;;  %v22_v22 = vrot.slane %v15_v21, %v21_v20  ;;  %v191_v27 = vld [vmem:[%s490_s1 + $0x68] sm:$0xff]  ;;  %v190_v28 = vld [vmem:[%s490_s1 + $0x60] sm:$0xff]  ;;  %v189_v29 = vld [vmem:[%s490_s1 + $0x58] sm:$0xff]  ;;  %v113_v31 = vrot.slane %v15_v21, %v112_v30  ;;  %v200_v37 = vrot.slane %v15_v21, %v199_v36 }
   0x8   :  { %337 = vmatprep.subr.mxu1 %v371_v0  ;;  %347 = vmatprep.mubr.msk.f32.mxu1 %vm372_vm1, %v371_v0  ;;  %v299_v41 = vld [vmem:[%s490_s1 + $0x98] ss:$0 sm:$0xff]  ;;  %v287_v46 = vrot.slane %v15_v21, %v286_v45 }
   0x9   :  { %338 = vmatpush3.msra.mxu1 %v106_v8  ;;  %350 = vmatprep.subr.mxu0 %v371_v0 }
   0xa   :  { %339 = vmatprep.subr.mxu1 %v371_v0  ;;  %366 = vmatprep.mubr.msk.f32.mxu0 %vm372_vm1, %v371_v0 }
   0xb   :  { %340 = vmatpush3.msra.mxu1 %v105_v9  ;;  %351 = vmatpush3.msra.mxu0 %v196_v13 }
   0xc   :  { %341 = vmatprep.subr.mxu1 %v371_v0  ;;  %352 = vmatprep.subr.mxu0 %v371_v0 }
   0xd   :  { %342 = vmatpush3.msra.mxu1 %v104_v10  ;;  %353 = vmatpush3.msra.mxu0 %v195_v14 }
   0xe   :  { %343 = vmatprep.subr.mxu1 %v371_v0  ;;  %354 = vmatprep.subr.mxu0 %v371_v0 }
   0xf   :  { %344 = vmatpush3.msra.mxu1 %v103_v11  ;;  %355 = vmatpush3.msra.mxu0 %v194_v15 }
  0x10   :  { %345 = vmatprep.subr.mxu1 %v371_v0  ;;  %356 = vmatprep.subr.mxu0 %v371_v0 }
  0x11   :  { %346 = vmatpush3.msra.mxu1 %v102_v12  ;;  %357 = vmatpush3.msra.mxu0 %v193_v16 }
  0x12   :  { %358 = vmatprep.subr.mxu0 %v371_v0 }
  0x13   :  { %359 = vmatpush3.msra.mxu0 %v192_v17 }
  0x14   :  { %360 = vmatprep.subr.mxu0 %v371_v0 }
  0x15   :  { %361 = vmatpush3.msra.mxu0 %v191_v27 }
  0x16   :  { %362 = vmatprep.subr.mxu0 %v371_v0 }
  0x17   :  { %363 = vmatpush3.msra.mxu0 %v190_v28 }
  0x18   :  { %364 = vmatprep.subr.mxu0 %v371_v0 }
  0x19   :  { %365 = vmatpush3.msra.mxu0 %v189_v29 }
  0xc7   :  { %v97_v23 = vpop.f32.mrf.mxu0 }
  0xc8   :  { %v98_v24 = vadd.f32 %v97_v23, %v22_v22 }
  0xc9   :  { %v330_v25 = vpop.f32.mrf.mxu0 }
  0xca   :  { %v101_v26 = vmax.f32 %v98_v24, 0.0 }
  0xcc   :  { %348 = vmatmul.mubr.msk.f32.vlgmr.msra.gmra.mxu1 %vm114_vm3, %v101_v26 }
 0x18c   :  { %v184_v32 = vpop.f32.mrf.mxu1 }
 0x18d   :  { %v185_v33 = vadd.f32 %v184_v32, %v113_v31 }
 0x18e   :  { %v349_v34 = vpop.f32.mrf.mxu1 }
 0x18f   :  { %v188_v35 = vmax.f32 %v185_v33, 0.0 }
 0x191   :  { %367 = vmatmul.mubr.msk.f32.vlgmr.msra.gmra.mxu0 %vm114_vm3, %v188_v35 }
 0x251   :  { %v270_v38 = vpop.f32.mrf.mxu0 }
 0x252   :  { %v271_v39 = vadd.f32 %v270_v38, %v200_v37 }
 0x253   :  { %v368_v40 = vpop.f32.mrf.mxu0 }
 0x254   :  { %v274_v42 = vmax.f32 %v271_v39, 0.0 }
 0x256   :  { %v280_v43 = vmul.f32 %v299_v41, %v274_v42 }
 0x258   :  { %v281_v44 = vsel %vm114_vm3, %v280_v43, 0.0 }
 0x259   :  { %282 = vadd.xlane.f32.xlu0 %v281_v44 }
 0x2e2   :  { %v283_v47 = vpop.xlane.xlu0 %282 }
 0x2e3   :  { %v288_v48 = vadd.f32 %v287_v46, %v283_v47 }
 0x2e5   :  { %290 = vst.msk [vmem:[%s493_s3] sm:$0xff] %vm289_vm4, %v288_v48 }

</bundles_post_ra>
